<compile_context>
chip_gen: v6e
topology: v6e:2x2x1
jax: 0.10.0
libtpu: 0.0.40
codegen_flags: <defaults>
</compile_context>

<pallas_src>
import jax
import jax.numpy as jnp
from jax.experimental import pallas as pl
from jax.experimental.pallas import tpu as pltpu


def _cdiv(a, b):
    return (a + b - 1) // b


def _mlp_critic_kernel(x_ref, w1_ref, b1_ref, w2_ref, b2_ref, w3_ref, b3_ref, out_ref):
    # x_ref: (tile_b, obs_dim), batch on sublanes / features on lanes, in obs' native dtype.
    # w1_ref: (obs_dim, h1), w2_ref: (h1, h2) in compute dtype; biases / w3 row in f32.
    x = x_ref[...].astype(w1_ref.dtype)                      # VPU cast, no extra HBM traffic
    # layer 1: (tile_b, obs_dim) @ (obs_dim, h1) -> (tile_b, h1), f32 accumulation on the MXU
    z1 = jnp.dot(x, w1_ref[...], preferred_element_type=jnp.float32) + b1_ref[...]
    a1 = jnp.tanh(z1)                                        # f32 tanh on the EUP (v5e-safe)
    # layer 2: (tile_b, h1) @ (h1, h2) -> (tile_b, h2)
    z2 = jnp.dot(a1.astype(w2_ref.dtype), w2_ref[...],
                 preferred_element_type=jnp.float32) + b2_ref[...]
    a2 = jnp.tanh(z2)
    # layer 3 (out_dim == 1): VPU multiply + lane reduce instead of an N=1 MXU pass.
    v = jnp.sum(a2 * w3_ref[...], axis=1, keepdims=True) + b3_ref[0, 0]
    out_ref[...] = v.astype(out_ref.dtype)                   # (tile_b, 1)


def _pick_tile_b(B, obs_dim, itemsize, tile_b=None):
    if tile_b is None:
        # ~0.5 MiB of obs per grid step amortizes the ~0.35 us per-step pipeline overhead.
        target_bytes = 512 * 1024
        tile_b = target_bytes // max(1, obs_dim * itemsize)
        tile_b = max(512, min(8192, tile_b))
        # keep >= 2 grid steps when the batch allows it so v7x's two TCs both get work.
        two_way = _cdiv(_cdiv(B, 2), 128) * 128
        tile_b = min(tile_b, max(128, two_way))
    # lane/sublane-friendly multiple of 128; never larger than needed to cover B.
    tile_b = max(128, (int(tile_b) // 128) * 128)
    tile_b = min(tile_b, _cdiv(B, 128) * 128)
    return int(tile_b)


def mlp_critic_forward(obs, params, *, tile_b=None, compute_dtype=jnp.bfloat16):
    """obs: (..., obs_dim).  params in PyTorch nn.Linear layout:
       w1 (h1, obs_dim), b1 (h1, 1), w2 (h2, h1), b2 (h2, 1), w3 (1, h2), b3 (1, 1).
       Returns (...,) f32 values (== .squeeze(-1) of the PyTorch forward)."""
    w1, b1, w2, b2, w3, b3 = params
    lead_shape = obs.shape[:-1]
    obs2d = obs.reshape((-1, obs.shape[-1]))
    B, obs_dim = obs2d.shape
    h1_dim = w1.shape[0]
    h2_dim = w2.shape[0]

    obs_itemsize = jnp.dtype(obs2d.dtype).itemsize
    tile_b = _pick_tile_b(B, obs_dim, obs_itemsize, tile_b)
    n_tiles = _cdiv(B, tile_b)

    # Tiny parameters: one-time transpose/cast in the wrapper (negligible HBM bytes).
    w1t = w1.T.astype(compute_dtype)                  # (obs_dim, h1)
    w2t = w2.T.astype(compute_dtype)                  # (h1, h2)
    b1r = b1.reshape(1, h1_dim).astype(jnp.float32)   # (1, h1) row -> sublane broadcast
    b2r = b2.reshape(1, h2_dim).astype(jnp.float32)   # (1, h2)
    w3r = w3.reshape(1, h2_dim).astype(jnp.float32)   # (1, h2) row for the VPU last layer
    b3s = b3.reshape(1, 1).astype(jnp.float32)        # scalar, lives in SMEM

    grid_spec = pltpu.PrefetchScalarGridSpec(
        num_scalar_prefetch=0,
        grid=(n_tiles,),
        in_specs=[
            pl.BlockSpec((tile_b, obs_dim), lambda i: (i, 0)),   # streamed obs tiles
            pl.BlockSpec((obs_dim, h1_dim), lambda i: (0, 0)),   # resident weights/biases
            pl.BlockSpec((1, h1_dim), lambda i: (0, 0)),
            pl.BlockSpec((h1_dim, h2_dim), lambda i: (0, 0)),
            pl.BlockSpec((1, h2_dim), lambda i: (0, 0)),
            pl.BlockSpec((1, h2_dim), lambda i: (0, 0)),
            pl.BlockSpec(memory_space=pltpu.MemorySpace.SMEM),   # b3 scalar
        ],
        out_specs=pl.BlockSpec((tile_b, 1), lambda i: (i, 0)),
    )

    # VMEM budget (bytes): double-buffered obs + output + activation temporaries + weights.
    lane_pad = lambda n: _cdiv(n, 128) * 128
    h_pad = lane_pad(max(h1_dim, h2_dim))
    vmem_est = (
        2 * tile_b * lane_pad(obs_dim) * obs_itemsize
        + 2 * tile_b * 128 * 4
        + 6 * tile_b * h_pad * 4
        + (lane_pad(h1_dim) * _cdiv(obs_dim, 8) * 8
           + lane_pad(h2_dim) * _cdiv(h1_dim, 8) * 8) * jnp.dtype(compute_dtype).itemsize
    )
    vmem_limit = int(min(max(vmem_est + (4 << 20), 32 << 20), 56 << 20))

    wsize = jnp.dtype(compute_dtype).itemsize
    cost = pl.CostEstimate(
        flops=2 * B * (obs_dim * h1_dim + h1_dim * h2_dim + h2_dim),
        transcendentals=B * (h1_dim + h2_dim),
        bytes_accessed=(B * obs_dim * obs_itemsize + B * 4
                        + (h1_dim * obs_dim + h1_dim * h2_dim) * wsize
                        + (h1_dim + h2_dim + h2_dim + 1) * 4),
    )

    out = pl.pallas_call(
        _mlp_critic_kernel,
        out_shape=jax.ShapeDtypeStruct((B, 1), jnp.float32),
        grid_spec=grid_spec,
        compiler_params=pltpu.CompilerParams(
            dimension_semantics=("parallel",),       # megacore: shard batch tiles across TCs
            vmem_limit_bytes=vmem_limit),
        cost_estimate=cost,
    )(obs2d, w1t, b1r, w2t, b2r, w3r, b3s)

    return out[:, 0].reshape(lead_shape)


def init_params(key, obs_dim, hidden_sizes=(64, 64)):
    """PyTorch nn.Linear default init (uniform +/-1/sqrt(fan_in)); weights stored (out, in)."""
    dims = [obs_dim] + list(hidden_sizes) + [1]
    params = []
    for i in range(len(dims) - 1):
        fan_in, fan_out = dims[i], dims[i + 1]
        key, kw, kb = jax.random.split(key, 3)
        bound = 1.0 / (fan_in ** 0.5)
        w = jax.random.uniform(kw, (fan_out, fan_in), jnp.float32, -bound, bound)
        b = jax.random.uniform(kb, (fan_out, 1), jnp.float32, -bound, bound)
        params.extend([w, b])
    return tuple(params)


def reference_forward(obs, params):
    w1, b1, w2, b2, w3, b3 = params
    h1 = jnp.tanh(obs @ w1.T + b1.T)
    h2 = jnp.tanh(h1 @ w2.T + b2.T)
    return (h2 @ w3.T + b3.T)[:, 0]


if __name__ == "__main__":
    key = jax.random.PRNGKey(0)
    k_obs, k_params = jax.random.split(key)

    B, OBS_DIM = 8, 32
    obs = jax.random.normal(k_obs, (B, OBS_DIM), dtype=jnp.float32)
    params = init_params(k_params, OBS_DIM, hidden_sizes=(64, 64))
    ref = reference_forward(obs, params)

    # exact f32 path
    out_f32 = jax.block_until_ready(
        mlp_critic_forward(obs, params, compute_dtype=jnp.float32))
    assert out_f32.shape == (B,), out_f32.shape
    assert jnp.allclose(out_f32, ref, atol=1e-5, rtol=1e-5), (out_f32, ref)

    # default bf16 MXU path (obs stays f32 in HBM; cast on the VPU in-kernel; f32 acc/tanh)
    out_bf16 = jax.block_until_ready(mlp_critic_forward(obs, params))
    assert out_bf16.shape == (B,)
    assert jnp.allclose(out_bf16, ref, atol=5e-2, rtol=5e-2), (out_bf16, ref)

    # multi-tile ragged batch with an explicit small tile: pipelining + masked last block.
    B2 = 300
    obs2 = jax.random.normal(k_obs, (B2, OBS_DIM), dtype=jnp.float32)
    ref2 = reference_forward(obs2, params)
    out2 = jax.block_until_ready(
        mlp_critic_forward(obs2, params, tile_b=128, compute_dtype=jnp.float32))
    assert out2.shape == (B2,)
    assert jnp.allclose(out2, ref2, atol=1e-5, rtol=1e-5)

    # larger batch exercising the auto tile heuristic (>=2 grid steps, ragged tail).
    B3 = 3000
    obs3 = jax.random.normal(k_obs, (B3, OBS_DIM), dtype=jnp.float32)
    ref3 = reference_forward(obs3, params)
    out3 = jax.block_until_ready(
        mlp_critic_forward(obs3, params, compute_dtype=jnp.float32))
    assert out3.shape == (B3,)
    assert jnp.allclose(out3, ref3, atol=1e-5, rtol=1e-5)

    print("KERNEL_OK")
</pallas_src>

<mosaic_0001>
module attributes {stable_mosaic.version = 11 : i64} {
  func.func @_mlp_critic_kernel(%arg0: i32, %arg1: memref<128x32xf32, #tpu.memory_space<vmem>>, %arg2: memref<32x64xf32, #tpu.memory_space<vmem>>, %arg3: memref<1x64xf32, #tpu.memory_space<vmem>>, %arg4: memref<64x64xf32, #tpu.memory_space<vmem>>, %arg5: memref<1x64xf32, #tpu.memory_space<vmem>>, %arg6: memref<1x64xf32, #tpu.memory_space<vmem>>, %arg7: memref<1x1xf32, #tpu.memory_space<smem>>, %arg8: memref<128x1xf32, #tpu.memory_space<vmem>>) attributes {dimension_semantics = [#tpu.dimension_semantics<parallel>], iteration_bounds = array<i64: 1>, scalar_prefetch = 0 : i64, scratch_operands = 0 : i64, tpu.core_type = #tpu.core_type<tc>, window_params = [{transform_indices = @transform_0, window_bounds = array<i64: 128, 32>}, {pipeline_mode = #tpu.pipeline_mode<synchronous>, transform_indices = @transform_1, window_bounds = array<i64: 32, 64>}, {pipeline_mode = #tpu.pipeline_mode<synchronous>, transform_indices = @transform_2, window_bounds = array<i64: 1, 64>}, {pipeline_mode = #tpu.pipeline_mode<synchronous>, transform_indices = @transform_3, window_bounds = array<i64: 64, 64>}, {pipeline_mode = #tpu.pipeline_mode<synchronous>, transform_indices = @transform_4, window_bounds = array<i64: 1, 64>}, {pipeline_mode = #tpu.pipeline_mode<synchronous>, transform_indices = @transform_5, window_bounds = array<i64: 1, 64>}, {transform_indices = @transform_6, window_bounds = array<i64: 1, 1>}, {transform_indices = @transform_7, window_bounds = array<i64: 128, 1>}]} {
    %c0 = arith.constant 0 : index
    %c0_0 = arith.constant 0 : index
    %0 = vector.load %arg1[%c0, %c0_0] : memref<128x32xf32, #tpu.memory_space<vmem>>, vector<128x32xf32>
    %c0_1 = arith.constant 0 : index
    %c0_2 = arith.constant 0 : index
    %1 = vector.load %arg2[%c0_1, %c0_2] : memref<32x64xf32, #tpu.memory_space<vmem>>, vector<32x64xf32>
    %cst = arith.constant dense<0.000000e+00> : vector<128x64xf32>
    %2 = tpu.matmul %0, %1, %cst {dimension_numbers = #tpu.dot_dimension_numbers<[1], [0], [0], [1], [0, 0, 1, 1], [], []>} : vector<128x32xf32>, vector<32x64xf32>, vector<128x64xf32> -> vector<128x64xf32>
    %c0_3 = arith.constant 0 : index
    %c0_4 = arith.constant 0 : index
    %3 = vector.load %arg3[%c0_3, %c0_4] : memref<1x64xf32, #tpu.memory_space<vmem>>, vector<1x64xf32>
    %4 = vector.broadcast %3 : vector<1x64xf32> to vector<128x64xf32>
    %5 = arith.addf %2, %4 : vector<128x64xf32>
    %6 = math.tanh %5 : vector<128x64xf32>
    %c0_5 = arith.constant 0 : index
    %c0_6 = arith.constant 0 : index
    %7 = vector.load %arg4[%c0_5, %c0_6] : memref<64x64xf32, #tpu.memory_space<vmem>>, vector<64x64xf32>
    %cst_7 = arith.constant dense<0.000000e+00> : vector<128x64xf32>
    %8 = tpu.matmul %6, %7, %cst_7 {dimension_numbers = #tpu.dot_dimension_numbers<[1], [0], [0], [1], [0, 0, 1, 1], [], []>} : vector<128x64xf32>, vector<64x64xf32>, vector<128x64xf32> -> vector<128x64xf32>
    %c0_8 = arith.constant 0 : index
    %c0_9 = arith.constant 0 : index
    %9 = vector.load %arg5[%c0_8, %c0_9] : memref<1x64xf32, #tpu.memory_space<vmem>>, vector<1x64xf32>
    %10 = vector.broadcast %9 : vector<1x64xf32> to vector<128x64xf32>
    %11 = arith.addf %8, %10 : vector<128x64xf32>
    %12 = math.tanh %11 : vector<128x64xf32>
    %c0_10 = arith.constant 0 : index
    %c0_11 = arith.constant 0 : index
    %13 = vector.load %arg6[%c0_10, %c0_11] : memref<1x64xf32, #tpu.memory_space<vmem>>, vector<1x64xf32>
    %14 = vector.broadcast %13 : vector<1x64xf32> to vector<128x64xf32>
    %15 = arith.mulf %12, %14 : vector<128x64xf32>
    %cst_12 = arith.constant dense<0.000000e+00> : vector<128xf32>
    %16 = vector.multi_reduction <add>, %15, %cst_12 [1] : vector<128x64xf32> to vector<128xf32>
    %17 = vector.shape_cast %16 : vector<128xf32> to vector<128x1xf32>
    %c0_13 = arith.constant 0 : index
    %c0_14 = arith.constant 0 : index
    %18 = memref.load %arg7[%c0_13, %c0_14] : memref<1x1xf32, #tpu.memory_space<smem>>
    %19 = vector.broadcast %18 : f32 to vector<128x1xf32>
    %20 = arith.addf %17, %19 : vector<128x1xf32>
    %c0_15 = arith.constant 0 : index
    %c0_16 = arith.constant 0 : index
    %21 = vector.load %arg8[%c0_15, %c0_16] : memref<128x1xf32, #tpu.memory_space<vmem>>, vector<128x1xf32>
    tpu.vector_store %arg8[%c0_15, %c0_16], %20 {strides = array<i32>} : memref<128x1xf32, #tpu.memory_space<vmem>>, vector<128x1xf32>,
    return
  }
  func.func @transform_0(%arg0: i32) -> (i32, i32) {
    %c0_i32 = arith.constant 0 : i32
    %c0_i32_0 = arith.constant 0 : i32
    return %arg0, %c0_i32 : i32, i32
  }
  func.func @transform_1(%arg0: i32) -> (i32, i32) {
    %c0_i32 = arith.constant 0 : i32
    %c0_i32_0 = arith.constant 0 : i32
    %c0_i32_1 = arith.constant 0 : i32
    return %c0_i32, %c0_i32_0 : i32, i32
  }
  func.func @transform_2(%arg0: i32) -> (i32, i32) {
    %c0_i32 = arith.constant 0 : i32
    %c0_i32_0 = arith.constant 0 : i32
    %c0_i32_1 = arith.constant 0 : i32
    return %c0_i32, %c0_i32_0 : i32, i32
  }
  func.func @transform_3(%arg0: i32) -> (i32, i32) {
    %c0_i32 = arith.constant 0 : i32
    %c0_i32_0 = arith.constant 0 : i32
    %c0_i32_1 = arith.constant 0 : i32
    return %c0_i32, %c0_i32_0 : i32, i32
  }
  func.func @transform_4(%arg0: i32) -> (i32, i32) {
    %c0_i32 = arith.constant 0 : i32
    %c0_i32_0 = arith.constant 0 : i32
    %c0_i32_1 = arith.constant 0 : i32
    return %c0_i32, %c0_i32_0 : i32, i32
  }
  func.func @transform_5(%arg0: i32) -> (i32, i32) {
    %c0_i32 = arith.constant 0 : i32
    %c0_i32_0 = arith.constant 0 : i32
    %c0_i32_1 = arith.constant 0 : i32
    return %c0_i32, %c0_i32_0 : i32, i32
  }
  func.func @transform_6(%arg0: i32) -> (i32, i32) {
    %c0_i32 = arith.constant 0 : i32
    %c0_i32_0 = arith.constant 0 : i32
    %c0_i32_1 = arith.constant 0 : i32
    return %c0_i32, %c0_i32_0 : i32, i32
  }
  func.func @transform_7(%arg0: i32) -> (i32, i32) {
    %c0_i32 = arith.constant 0 : i32
    %c0_i32_0 = arith.constant 0 : i32
    return %arg0, %c0_i32 : i32, i32
  }
}

</mosaic_0001>

<bundles_post_ra>
// kernel: tpu_custom_call.1
= control target key start
LH: loop header
LB: loop body
LE: loop exit
PB: predicated region body
PF: predicated region fallthrough
CT: control target
= control target key end

     0   :  { %13 = vsyncpa [#allocation4], 0  ;;  %s1132_s0 = inlined_call_operand.hbm [shape: f32[8,32], index: 0, kind: input, shape index: {}]   ;;  %s1133_s1 = inlined_call_operand.hbm [shape: f32[32,64], index: 1, kind: input, shape index: {}]   ;;  %s1134_s2 = inlined_call_operand.vmem [shape: f32[1,64], index: 2, kind: input, shape index: {}]   ;;  %s1135_s3 = inlined_call_operand.hbm [shape: f32[64,64], index: 3, kind: input, shape index: {}]   ;;  %s1136_s4 = inlined_call_operand.vmem [shape: f32[1,64], index: 4, kind: input, shape index: {}]   ;;  %s1137_s5 = inlined_call_operand.vmem [shape: f32[1,64], index: 5, kind: input, shape index: {}]   ;;  %s1138_s6 = inlined_call_operand.<no memory space> [shape: f32[1,1], index: 6, kind: input, shape index: {}]   ;;  %s1139_s7 = inlined_call_operand.vmem [shape: f32[8,1], index: 7, kind: output, shape index: {}]  }
   0x1   :  { %14 = vsyncpa [#allocation6], 0 }
   0x2   :  { %19 = vsyncadd [#allocation4], 1920  ;;  %s979_s24 = smov [#allocation5]   ;;  %s980_s26 = smov [#allocation3]  }
   0x3   :  { %s32_s25 = sshll.u32 %s979_s24, 4  ;;  %s20_s27 = sshll.u32 %s980_s26, 4  ;;  %s33_s25 = int_to_ptr.vmem [resolvable:$true] %s32_s25  ;;  %s21_s27 = int_to_ptr.vmem [resolvable:$true] %s20_s27 }
   0x4   :  { %s923_s28 = scalar_lea.vmem %s33_s25, 512  ;;  %p928_p1 = scmp.lt.s32.totalorder %s33_s25, %s33_s25 }
   0x5   :  { %p924_p0 = scmp.ne.s32.totalorder %s33_s25, %s923_s28  ;;  %p929_p2 = scmp.lt.s32.totalorder %s923_s28, %s923_s28 }
   0x7   :  { %p930_p3 = por %p929_p2, %p928_p1 }
   0x9   :  { %p931_p4 = pnand %p930_p3, %p924_p0 }
   0xb   :  { %934 = shalt.err (!%p931_p4)
}
   0xc   :  { %s981_s29 = smov 128   ;;  %s982_s30 = smov 8  }
   0xd   :  { %38 = dma.hbm_to_vmem [thread:$0]  %s1133_s1, 512, %s33_s25, [#allocation6], %s981_s29, %s981_s29, %s982_s30  }
   0xe   :  { %s943_s10 = scalar_lea.vmem %s21_s27, 128  ;;  %s947_s11 = scalar_lea.vmem %s21_s27, 2048 }
   0xf   :  { %p944_p5 = scmp.ne.s32.totalorder %s21_s27, %s943_s10  ;;  %p948_p6 = scmp.lt.s32.totalorder %s21_s27, %s21_s27 }
  0x10   :  { %p949_p7 = scmp.lt.s32.totalorder %s947_s11, %s943_s10 }
  0x12   :  { %p950_p8 = por %p949_p7, %p948_p6 }
  0x14   :  { %p951_p9 = pnand %p950_p8, %p944_p5 }
  0x16   :  { %954 = shalt.err (!%p951_p9)
}
  0x17   :  { %26 = dma.hbm_to_vmem [thread:$0]  %s1132_s0, 128, %s21_s27, [#allocation4], %s981_s29, %s981_s29, %s982_s30  }
  0x18   :  { %s983_s14 = smov [#allocation7]  }
  0x19   :  { %s46_s15 = sshll.u32 %s983_s14, 4  ;;  %s47_s15 = int_to_ptr.vmem [resolvable:$true] %s46_s15 }
  0x1a   :  { %s963_s16 = scalar_lea.vmem %s47_s15, 1024  ;;  %p968_p11 = scmp.lt.s32.totalorder %s47_s15, %s47_s15 }
  0x1b   :  { %p964_p10 = scmp.ne.s32.totalorder %s47_s15, %s963_s16  ;;  %p969_p12 = scmp.lt.s32.totalorder %s963_s16, %s963_s16 }
  0x1d   :  { %p970_p13 = por %p969_p12, %p968_p11 }
  0x1f   :  { %p971_p0 = pnand %p970_p13, %p964_p10 }
  0x21   :  { %974 = shalt.err (!%p971_p0)
}
  0x22   :  { %52 = dma.hbm_to_vmem [thread:$0]  %s1135_s3, 1024, %s47_s15, [#allocation6], %s981_s29, %s981_s29, %s982_s30  }
  0x23   :  { %975 = dma.done.wait [#allocation4], 2048  }
  0x24   :  { %976 = vsyncadd [#allocation4], 4294965248 }
  0x25   :  { %977 = dma.done.wait [#allocation6], 1536  }
  0x26   :  { %978 = vsyncadd [#allocation6], 4294965760  ;;  %vm95_vm0 = vcmask 261120   ;;  %v87_v0 = vld [vmem:[#allocation5 + $0x18] sm:$0xff]  ;;  %v86_v1 = vld [vmem:[#allocation5 + $0x10] sm:$0xff]  ;;  %vm320_vm1 = vcmask 523264  }
  0x27   :  { %758 = vmatprep.subr.mxu0 %v87_v0  ;;  %v68_v2 = vld [vmem:[#allocation3] sm:$0xff]  ;;  %v85_v3 = vld [vmem:[#allocation5 + $0x8] sm:$0xff]  ;;  %v312_v6 = vld [vmem:[#allocation7 + $0x38] sm:$0xff]  ;;  %vm619_vm2 = vcmask 7168  }
  0x28   :  { %759 = vmatpush3.msra.mxu0 %v87_v0  ;;  %766 = vmatprep.mubr.msk.f32.mxu0 %vm95_vm0, %v68_v2  ;;  %v84_v4 = vld [vmem:[#allocation5] sm:$0xff]  ;;  %v69_v5 = vld [vmem:[#allocation3 + $0x8] sm:$0xff]  ;;  %v70_v7 = vld [vmem:[#allocation3 + $0x10] sm:$0xff] }
  0x29   :  { %760 = vmatprep.subr.mxu0 %v86_v1  ;;  %830 = vmatprep.subr.mxu1 %v312_v6  ;;  %v311_v8 = vld [vmem:[#allocation7 + $0x30] sm:$0xff]  ;;  %v71_v9 = vld [vmem:[#allocation3 + $0x18] sm:$0xff]  ;;  %v310_v10 = vld [vmem:[#allocation7 + $0x28] sm:$0xff] }
  0x2a   :  { %761 = vmatpush3.msra.mxu0 %v86_v1  ;;  %838 = vmatpush3.msra.mxu1 %v312_v6  ;;  %v72_v11 = vld [vmem:[#allocation3 + $0x20] sm:$0xff]  ;;  %v73_v12 = vld [vmem:[#allocation3 + $0x28] sm:$0xff]  ;;  %v74_v13 = vld [vmem:[#allocation3 + $0x30] sm:$0xff] }
  0x2b   :  { %762 = vmatprep.subr.mxu0 %v85_v3  ;;  %831 = vmatprep.subr.mxu1 %v311_v8  ;;  %v75_v14 = vld [vmem:[#allocation3 + $0x38] sm:$0xff]  ;;  %v76_v15 = vld [vmem:[#allocation3 + $0x40] sm:$0xff]  ;;  %v77_v16 = vld [vmem:[#allocation3 + $0x48] sm:$0xff] }
  0x2c   :  { %763 = vmatpush3.msra.mxu0 %v85_v3  ;;  %839 = vmatpush3.msra.mxu1 %v311_v8  ;;  %v78_v17 = vld [vmem:[#allocation3 + $0x50] sm:$0xff]  ;;  %v79_v18 = vld [vmem:[#allocation3 + $0x58] sm:$0xff]  ;;  %v80_v19 = vld [vmem:[#allocation3 + $0x60] sm:$0xff] }
  0x2d   :  { %764 = vmatprep.subr.mxu0 %v84_v4  ;;  %832 = vmatprep.subr.mxu1 %v310_v10  ;;  %v81_v20 = vld [vmem:[#allocation3 + $0x68] sm:$0xff]  ;;  %v82_v21 = vld [vmem:[#allocation3 + $0x70] sm:$0xff]  ;;  %v83_v22 = vld [vmem:[#allocation3 + $0x78] sm:$0xff] }
  0x2e   :  { %765 = vmatpush3.msra.mxu0 %v84_v4  ;;  %840 = vmatpush3.msra.mxu1 %v310_v10  ;;  %v309_v23 = vld [vmem:[#allocation7 + $0x20] sm:$0xff]  ;;  %v308_v24 = vld [vmem:[#allocation7 + $0x18] sm:$0xff]  ;;  %v307_v25 = vld [vmem:[#allocation7 + $0x10] sm:$0xff] }
  0x2f   :  { %767 = vmatmul.mubr.msk.f32.vlgmr.msra.gmra.mxu0 %vm95_vm0, %v69_v5  ;;  %790 = vmatprep.subr.mxu0 %v312_v6  ;;  %v306_v26 = vld [vmem:[#allocation7 + $0x8] sm:$0xff]  ;;  %v305_v27 = vld [vmem:[#allocation7] sm:$0xff] }
  0x30   :  { %769 = vmatprep.mubr.msk.f32.mxu0 %vm95_vm0, %v70_v7  ;;  %791 = vmatpush3.msra.mxu0 %v312_v6  ;;  %v679_v28 = vld [vmem:[%s1134_s2] ss:$0 sm:$0xff] }
  0x31   :  { %792 = vmatprep.subr.mxu0 %v311_v8  ;;  %833 = vmatprep.subr.mxu1 %v309_v23 }
  0x32   :  { %793 = vmatpush3.msra.mxu0 %v311_v8  ;;  %841 = vmatpush3.msra.mxu1 %v309_v23 }
  0x33   :  { %770 = vmatmul.mubr.msk.f32.gmra.mxu0 %vm95_vm0, %v71_v9  ;;  %794 = vmatprep.subr.mxu0 %v310_v10 }
  0x34   :  { %772 = vmatprep.mubr.msk.f32.mxu0 %vm95_vm0, %v72_v11  ;;  %795 = vmatpush3.msra.mxu0 %v310_v10 }
  0x35   :  { %796 = vmatprep.subr.mxu0 %v309_v23  ;;  %834 = vmatprep.subr.mxu1 %v308_v24 }
  0x36   :  { %797 = vmatpush3.msra.mxu0 %v309_v23  ;;  %842 = vmatpush3.msra.mxu1 %v308_v24 }
  0x37   :  { %773 = vmatmul.mubr.msk.f32.gmra.mxu0 %vm95_vm0, %v73_v12  ;;  %798 = vmatprep.subr.mxu0 %v308_v24 }
  0x38   :  { %775 = vmatprep.mubr.msk.f32.mxu0 %vm95_vm0, %v74_v13  ;;  %799 = vmatpush3.msra.mxu0 %v308_v24  ;;  %v1071_v13 = vld [vmem:[%s1136_s4] ss:$0 sm:$0xff] }
  0x39   :  { %800 = vmatprep.subr.mxu0 %v307_v25  ;;  %835 = vmatprep.subr.mxu1 %v307_v25 }
  0x3a   :  { %801 = vmatpush3.msra.mxu0 %v307_v25  ;;  %843 = vmatpush3.msra.mxu1 %v307_v25 }
  0x3b   :  { %776 = vmatmul.mubr.msk.f32.gmra.mxu0 %vm95_vm0, %v75_v14  ;;  %802 = vmatprep.subr.mxu0 %v306_v26 }
  0x3c   :  { %778 = vmatprep.mubr.msk.f32.mxu0 %vm95_vm0, %v76_v15  ;;  %836 = vmatprep.subr.mxu1 %v306_v26 }
  0x3d   :  { %803 = vmatpush3.msra.mxu0 %v306_v26  ;;  %844 = vmatpush3.msra.mxu1 %v306_v26 }
  0x3e   :  { %804 = vmatprep.subr.mxu0 %v305_v27  ;;  %837 = vmatprep.subr.mxu1 %v305_v27 }
  0x3f   :  { %779 = vmatmul.mubr.msk.f32.gmra.mxu0 %vm95_vm0, %v77_v16  ;;  %845 = vmatpush3.msra.mxu1 %v305_v27 }
  0x40   :  { %781 = vmatprep.mubr.msk.f32.mxu0 %vm95_vm0, %v78_v17  ;;  %805 = vmatpush3.msra.mxu0 %v305_v27 }
  0x43   :  { %782 = vmatmul.mubr.msk.f32.gmra.mxu0 %vm95_vm0, %v79_v18 }
  0x44   :  { %784 = vmatprep.mubr.msk.f32.mxu0 %vm95_vm0, %v80_v19 }
  0x47   :  { %785 = vmatmul.mubr.msk.f32.gmra.mxu0 %vm95_vm0, %v81_v20 }
  0x48   :  { %787 = vmatprep.mubr.msk.f32.mxu0 %vm95_vm0, %v82_v21 }
  0x4b   :  { %788 = vmatmul.mubr.msk.f32.gmra.mxu0 %vm95_vm0, %v83_v22 }
  0xef   :  { %v768_v29 = vpop.f32.mrf.mxu0 }
  0xf0   :  { %v216_v30 = vadd.f32 %v768_v29, %v679_v28  ;;  %v1083_v29 = vld [vmem:[%s1137_s5] ss:$0 sm:$0xff] }
  0xf1   :  { %v210_v31 = vpop.f32.mrf.mxu0 }
  0xf2   :  { %v211_v32 = vadd.f32 %v679_v28, %v210_v31 }
  0xf3   :  { %v771_v33 = vpop.f32.mrf.mxu0 }
  0xf4   :  { %851 = vtanh.f32 %v211_v32  ;;  %v226_v34 = vadd.f32 %v771_v33, %v679_v28 }
  0xf5   :  { %853 = vtanh.f32 %v216_v30  ;;  %v220_v35 = vpop.f32.mrf.mxu0 }
  0xf6   :  { %v221_v36 = vadd.f32 %v679_v28, %v220_v35 }
  0xf7   :  { %v774_v37 = vpop.f32.mrf.mxu0 }
  0xf8   :  { %855 = vtanh.f32 %v221_v36  ;;  %v236_v38 = vadd.f32 %v774_v37, %v679_v28 }
  0xf9   :  { %857 = vtanh.f32 %v226_v34  ;;  %v230_v39 = vpop.f32.mrf.mxu0 }
  0xfa   :  { %v231_v40 = vadd.f32 %v679_v28, %v230_v39  ;;  %859 = vtanh.f32 %v236_v38 }
  0xfb   :  { %v777_v41 = vpop.f32.mrf.mxu0 }
  0xfc   :  { %861 = vtanh.f32 %v231_v40  ;;  %v246_v42 = vadd.f32 %v777_v41, %v679_v28 }
  0xfd   :  { %v240_v43 = vpop.f32.mrf.mxu0 }
  0xfe   :  { %v241_v44 = vadd.f32 %v679_v28, %v240_v43  ;;  %863 = vtanh.f32 %v246_v42 }
  0xff   :  { %v780_v45 = vpop.f32.mrf.mxu0 }
 0x100   :  { %865 = vtanh.f32 %v241_v44  ;;  %v256_v46 = vadd.f32 %v780_v45, %v679_v28 }
 0x101   :  { %v852_v47 = vpop.eup %851  ;;  %v250_v48 = vpop.f32.mrf.mxu0 }
 0x102   :  { %v854_v49 = vpop.eup %853  ;;  %v251_v50 = vadd.f32 %v679_v28, %v250_v48  ;;  %806 = vmatprep.mubr.msk.f32.mxu0 %vm320_vm1, %v852_v47  ;;  %867 = vtanh.f32 %v256_v46 }
 0x103   :  { %v783_v51 = vpop.f32.mrf.mxu0  ;;  %807 = vmatmul.mubr.msk.f32.vlgmr.msra.gmra.mxu0 %vm320_vm1, %v854_v49 }
 0x104   :  { %869 = vtanh.f32 %v251_v50  ;;  %v266_v52 = vadd.f32 %v783_v51, %v679_v28 }
 0x105   :  { %v856_v53 = vpop.eup %855  ;;  %v260_v54 = vpop.f32.mrf.mxu0 }
 0x106   :  { %v858_v55 = vpop.eup %857  ;;  %v261_v56 = vadd.f32 %v679_v28, %v260_v54  ;;  %809 = vmatprep.mubr.msk.f32.mxu1 %vm320_vm1, %v856_v53  ;;  %871 = vtanh.f32 %v266_v52 }
 0x107   :  { %v786_v57 = vpop.f32.mrf.mxu0  ;;  %810 = vmatmul.mubr.msk.f32.vlgmr.msra.gmra.mxu1 %vm320_vm1, %v858_v55  ;;  %v860_v58 = vpop.eup %859 }
 0x108   :  { %873 = vtanh.f32 %v261_v56  ;;  %v276_v59 = vadd.f32 %v786_v57, %v679_v28 }
 0x109   :  { %v862_v60 = vpop.eup %861  ;;  %v270_v61 = vpop.f32.mrf.mxu0 }
 0x10a   :  { %v271_v62 = vadd.f32 %v679_v28, %v270_v61  ;;  %812 = vmatprep.mubr.msk.f32.mxu1 %vm320_vm1, %v862_v60  ;;  %875 = vtanh.f32 %v276_v59 }
 0x10b   :  { %v789_v63 = vpop.f32.mrf.mxu0  ;;  %813 = vmatmul.mubr.msk.f32.gmra.mxu1 %vm320_vm1, %v860_v58  ;;  %v864_v0 = vpop.eup %863 }
 0x10c   :  { %877 = vtanh.f32 %v271_v62  ;;  %v286_v1 = vadd.f32 %v789_v63, %v679_v28 }
 0x10d   :  { %v866_v2 = vpop.eup %865  ;;  %v280_v3 = vpop.f32.mrf.mxu0 }
 0x10e   :  { %v281_v4 = vadd.f32 %v679_v28, %v280_v3  ;;  %815 = vmatprep.mubr.msk.f32.mxu1 %vm320_vm1, %v866_v2  ;;  %879 = vtanh.f32 %v286_v1 }
 0x10f   :  { %816 = vmatmul.mubr.msk.f32.gmra.mxu1 %vm320_vm1, %v864_v0  ;;  %v868_v5 = vpop.eup %867 }
 0x110   :  { %881 = vtanh.f32 %v281_v4 }
 0x111   :  { %v870_v6 = vpop.eup %869 }
 0x112   :  { %818 = vmatprep.mubr.msk.f32.mxu1 %vm320_vm1, %v870_v6 }
 0x113   :  { %819 = vmatmul.mubr.msk.f32.gmra.mxu1 %vm320_vm1, %v868_v5  ;;  %v872_v7 = vpop.eup %871 }
 0x115   :  { %v874_v8 = vpop.eup %873 }
 0x116   :  { %821 = vmatprep.mubr.msk.f32.mxu1 %vm320_vm1, %v874_v8 }
 0x117   :  { %822 = vmatmul.mubr.msk.f32.gmra.mxu1 %vm320_vm1, %v872_v7  ;;  %v876_v9 = vpop.eup %875 }
 0x119   :  { %v878_v10 = vpop.eup %877 }
 0x11a   :  { %824 = vmatprep.mubr.msk.f32.mxu1 %vm320_vm1, %v878_v10 }
 0x11b   :  { %825 = vmatmul.mubr.msk.f32.gmra.mxu1 %vm320_vm1, %v876_v9  ;;  %v880_v11 = vpop.eup %879 }
 0x11d   :  { %v882_v12 = vpop.eup %881 }
 0x11e   :  { %827 = vmatprep.mubr.msk.f32.mxu1 %vm320_vm1, %v882_v12 }
 0x11f   :  { %828 = vmatmul.mubr.msk.f32.gmra.mxu1 %vm320_vm1, %v880_v11 }
 0x1c3   :  { %v808_v14 = vpop.f32.mrf.mxu0 }
 0x1c4   :  { %v441_v15 = vadd.f32 %v808_v14, %v1071_v13 }
 0x1c5   :  { %v435_v16 = vpop.f32.mrf.mxu0 }
 0x1c6   :  { %883 = vtanh.f32 %v441_v15  ;;  %v436_v17 = vadd.f32 %v1071_v13, %v435_v16 }
 0x1c7   :  { %v811_v18 = vpop.f32.mrf.mxu1 }
 0x1c8   :  { %885 = vtanh.f32 %v436_v17  ;;  %v451_v19 = vadd.f32 %v811_v18, %v1071_v13 }
 0x1c9   :  { %v445_v20 = vpop.f32.mrf.mxu1 }
 0x1ca   :  { %887 = vtanh.f32 %v451_v19  ;;  %v446_v21 = vadd.f32 %v1071_v13, %v445_v20 }
 0x1cb   :  { %v814_v22 = vpop.f32.mrf.mxu1 }
 0x1cc   :  { %889 = vtanh.f32 %v446_v21  ;;  %v461_v23 = vadd.f32 %v814_v22, %v1071_v13 }
 0x1cd   :  { %v455_v24 = vpop.f32.mrf.mxu1 }
 0x1ce   :  { %891 = vtanh.f32 %v461_v23  ;;  %v456_v25 = vadd.f32 %v1071_v13, %v455_v24 }
 0x1cf   :  { %v817_v26 = vpop.f32.mrf.mxu1 }
 0x1d0   :  { %893 = vtanh.f32 %v456_v25  ;;  %v471_v27 = vadd.f32 %v817_v26, %v1071_v13 }
 0x1d1   :  { %v465_v28 = vpop.f32.mrf.mxu1 }
 0x1d2   :  { %895 = vtanh.f32 %v471_v27  ;;  %v466_v30 = vadd.f32 %v1071_v13, %v465_v28 }
 0x1d3   :  { %v884_v31 = vpop.eup %883  ;;  %v820_v32 = vpop.f32.mrf.mxu1 }
 0x1d4   :  { %897 = vtanh.f32 %v466_v30  ;;  %v481_v33 = vadd.f32 %v820_v32, %v1071_v13  ;;  %v538_v34 = vmul.f32 %v884_v31, %v1083_v29  ;;  %v602_v32 = vstv %s1138_s6 }
 0x1d5   :  { %v886_v35 = vpop.eup %885  ;;  %v475_v36 = vpop.f32.mrf.mxu1 }
 0x1d6   :  { %899 = vtanh.f32 %v481_v33  ;;  %v476_v37 = vadd.f32 %v1071_v13, %v475_v36  ;;  %v556_v38 = vsel %vm320_vm1, %v538_v34, 0.0  ;;  %v537_v39 = vmul.f32 %v886_v35, %v1083_v29 }
 0x1d7   :  { %v888_v40 = vpop.eup %887  ;;  %v823_v41 = vpop.f32.mrf.mxu1  ;;  %557 = vadd.xlane.f32.xlu0 %v556_v38 }
 0x1d8   :  { %901 = vtanh.f32 %v476_v37  ;;  %v491_v42 = vadd.f32 %v823_v41, %v1071_v13  ;;  %v540_v43 = vmul.f32 %v888_v40, %v1083_v29  ;;  %v553_v46 = vsel %vm320_vm1, %v537_v39, 0.0 }
 0x1d9   :  { %v890_v44 = vpop.eup %889  ;;  %v485_v45 = vpop.f32.mrf.mxu1 }
 0x1da   :  { %903 = vtanh.f32 %v491_v42  ;;  %v486_v47 = vadd.f32 %v1071_v13, %v485_v45  ;;  %v562_v48 = vsel %vm320_vm1, %v540_v43, 0.0  ;;  %v539_v49 = vmul.f32 %v890_v44, %v1083_v29 }
 0x1db   :  { %v892_v50 = vpop.eup %891  ;;  %563 = vadd.xlane.f32.xlu1 %v562_v48  ;;  %v826_v51 = vpop.f32.mrf.mxu1  ;;  %554 = vadd.xlane.f32.xlu0 %v553_v46 }
 0x1dc   :  { %905 = vtanh.f32 %v486_v47  ;;  %v501_v52 = vadd.f32 %v826_v51, %v1071_v13  ;;  %v542_v55 = vmul.f32 %v892_v50, %v1083_v29  ;;  %v559_v57 = vsel %vm320_vm1, %v539_v49, 0.0 }
 0x1dd   :  { %v894_v53 = vpop.eup %893  ;;  %v495_v54 = vpop.f32.mrf.mxu1 }
 0x1de   :  { %907 = vtanh.f32 %v501_v52  ;;  %v496_v56 = vadd.f32 %v1071_v13, %v495_v54  ;;  %v541_v58 = vmul.f32 %v894_v53, %v1083_v29  ;;  %v568_v1 = vsel %vm320_vm1, %v542_v55, 0.0 }
 0x1df   :  { %v896_v59 = vpop.eup %895  ;;  %v829_v60 = vpop.f32.mrf.mxu1  ;;  %560 = vadd.xlane.f32.xlu1 %v559_v57 }
 0x1e0   :  { %909 = vtanh.f32 %v496_v56  ;;  %v511_v61 = vadd.f32 %v829_v60, %v1071_v13  ;;  %v565_v62 = vsel %vm320_vm1, %v541_v58, 0.0  ;;  %v544_v4 = vmul.f32 %v896_v59, %v1083_v29 }
 0x1e1   :  { %v898_v63 = vpop.eup %897  ;;  %v505_v0 = vpop.f32.mrf.mxu1  ;;  %566 = vadd.xlane.f32.xlu0 %v565_v62 }
 0x1e2   :  { %911 = vtanh.f32 %v511_v61  ;;  %v506_v2 = vadd.f32 %v1071_v13, %v505_v0  ;;  %v543_v3 = vmul.f32 %v898_v63, %v1083_v29  ;;  %v574_v8 = vsel %vm320_vm1, %v544_v4, 0.0 }
 0x1e3   :  { %v900_v5 = vpop.eup %899  ;;  %569 = vadd.xlane.f32.xlu1 %v568_v1 }
 0x1e4   :  { %913 = vtanh.f32 %v506_v2  ;;  %v571_v6 = vsel %vm320_vm1, %v543_v3, 0.0  ;;  %v546_v10 = vmul.f32 %v900_v5, %v1083_v29 }
 0x1e5   :  { %v902_v7 = vpop.eup %901  ;;  %572 = vadd.xlane.f32.xlu0 %v571_v6 }
 0x1e6   :  { %v545_v9 = vmul.f32 %v902_v7, %v1083_v29  ;;  %v580_v14 = vsel %vm320_vm1, %v546_v10, 0.0 }
 0x1e7   :  { %v904_v11 = vpop.eup %903  ;;  %575 = vadd.xlane.f32.xlu1 %v574_v8 }
 0x1e8   :  { %v577_v12 = vsel %vm320_vm1, %v545_v9, 0.0  ;;  %v548_v16 = vmul.f32 %v904_v11, %v1083_v29 }
 0x1e9   :  { %v906_v13 = vpop.eup %905  ;;  %578 = vadd.xlane.f32.xlu0 %v577_v12 }
 0x1ea   :  { %v547_v15 = vmul.f32 %v906_v13, %v1083_v29  ;;  %v586_v20 = vsel %vm320_vm1, %v548_v16, 0.0 }
 0x1eb   :  { %v908_v17 = vpop.eup %907  ;;  %581 = vadd.xlane.f32.xlu1 %v580_v14 }
 0x1ec   :  { %v583_v18 = vsel %vm320_vm1, %v547_v15, 0.0  ;;  %v550_v22 = vmul.f32 %v908_v17, %v1083_v29 }
 0x1ed   :  { %v910_v19 = vpop.eup %909  ;;  %584 = vadd.xlane.f32.xlu0 %v583_v18 }
 0x1ee   :  { %v549_v21 = vmul.f32 %v910_v19, %v1083_v29  ;;  %v592_v26 = vsel %vm320_vm1, %v550_v22, 0.0 }
 0x1ef   :  { %v912_v23 = vpop.eup %911  ;;  %587 = vadd.xlane.f32.xlu1 %v586_v20 }
 0x1f0   :  { %v589_v24 = vsel %vm320_vm1, %v549_v21, 0.0  ;;  %v552_v28 = vmul.f32 %v912_v23, %v1083_v29 }
 0x1f1   :  { %v914_v25 = vpop.eup %913  ;;  %590 = vadd.xlane.f32.xlu0 %v589_v24 }
 0x1f2   :  { %v551_v27 = vmul.f32 %v914_v25, %v1083_v29  ;;  %v598_v31 = vsel %vm320_vm1, %v552_v28, 0.0 }
 0x1f3   :  { %593 = vadd.xlane.f32.xlu1 %v592_v26 }
 0x1f4   :  { %v595_v30 = vsel %vm320_vm1, %v551_v27, 0.0 }
 0x1f5   :  { %596 = vadd.xlane.f32.xlu0 %v595_v30 }
 0x1f7   :  { %599 = vadd.xlane.f32.xlu1 %v598_v31 }
 0x260   :  { %v558_v33 = vpop.xlane.xlu0 %557 }
 0x264   :  { %v564_v34 = vpop.xlane.xlu1 %563  ;;  %v555_v35 = vpop.xlane.xlu0 %554 }
 0x265   :  { %v603_v36 = vadd.f32 %v602_v32, %v555_v35 }
 0x267   :  { %620 = vst.msk [vmem:[#allocation8] sm:$0xff] %vm619_vm2, %v603_v36 }
 0x268   :  { %v561_v37 = vpop.xlane.xlu1 %560 }
 0x26a   :  { %v567_v38 = vpop.xlane.xlu0 %566 }
 0x26c   :  { %v570_v29 = vpop.xlane.xlu1 %569 }
 0x26e   :  { %v666_v39 = vld [vmem:[#allocation8] sm:$0xff]  ;;  %v573_v40 = vpop.xlane.xlu0 %572 }
 0x26f   :  { %667 = vst [vmem:[%s1139_s7] sm:$0xff] %v666_v39 }
 0x270   :  { %v576_v41 = vpop.xlane.xlu1 %575 }
 0x272   :  { %v579_v42 = vpop.xlane.xlu0 %578 }
 0x274   :  { %v582_v43 = vpop.xlane.xlu1 %581 }
 0x276   :  { %v585_v44 = vpop.xlane.xlu0 %584 }
 0x278   :  { %v588_v45 = vpop.xlane.xlu1 %587 }
 0x27a   :  { %v591_v46 = vpop.xlane.xlu0 %590 }
 0x27c   :  { %v594_v47 = vpop.xlane.xlu1 %593 }
 0x27e   :  { %v597_v48 = vpop.xlane.xlu0 %596 }
 0x280   :  { %v600_v49 = vpop.xlane.xlu1 %599 }
 0x281   :  { %673 = vsyncpa [#allocation4], 1 }
 0x282   :  { %674 = vsyncpa [#allocation6], 1 }

</bundles_post_ra>
